<compile_context>
chip_gen: v7x
topology: tpu7x:2x2x1
jax: 0.10.0
libtpu: 0.0.40
codegen_flags: <defaults>
</compile_context>

<pallas_src>
import functools

import jax
import jax.numpy as jnp
from jax.experimental import pallas as pl
from jax.experimental.pallas import tpu as pltpu

_MIB = 1024 * 1024


def _gelu_tanh(x):
    # Megatron gelu_impl: 0.5*x*(1+tanh(0.7978845608*x*(1+0.044715*x*x)))
    return 0.5 * x * (1.0 + jnp.tanh(0.7978845608028654 * x * (1.0 + 0.044715 * x * x)))


def _round_up(a, m):
    return -(-a // m) * m


def _vmem_capacity_bytes():
    try:
        cap = getattr(pltpu.get_tpu_info(), "vmem_capacity_bytes", None)
        if cap:
            return int(cap)
    except Exception:
        pass
    return 64 * _MIB  # conservative: v7x per-TensorCore VMEM


def _balance_tm(tm, M):
    # v7x has 2 TensorCores: make sure the "parallel" token axis has >= 2 tiles
    # when there is enough work, so one core does not idle.
    while tm >= 256 and -(-M // tm) < 2:
        tm //= 2
    return tm


def _select_config(M, H, H4, x_itemsize, out_itemsize, tm_req, tn4_req, force_streamed):
    vmem_cap = _vmem_capacity_bytes()
    # Scoped limit with headroom for compiler-internal scratch / semaphores:
    # v7x (64 MiB physical) -> 56 MiB, v5e/v6e (128 MiB) -> 104 MiB.
    vmem_limit = int(min(vmem_cap - 8 * _MIB, 104 * _MIB))
    budget = int(vmem_limit * 0.9)

    def resident_bytes(tm):
        wts = 2 * (H * H4 * 2) * 2                      # W1 + W2 bf16, double-buffered
        act = tm * H * (x_itemsize + out_itemsize) * 2  # x / out tiles, double-buffered
        inter = tm * H4 * (4 + 2) + tm * H * 4          # h1 f32, g bf16, y f32
        return wts + act + inter + (H4 + H) * 4 * 2

    def streamed_bytes(tm, tn4):
        wts = 2 * (H * tn4 * 2) * 2                     # W1/W2 slices bf16, double-buffered
        act = tm * H * (x_itemsize + out_itemsize) * 2
        acc = tm * H * 4                                # f32 accumulator scratch
        inter = tm * tn4 * (4 + 2)                      # h1 f32, g bf16
        return wts + act + acc + inter + (tn4 + H) * 4 * 2

    tm_cands = (1024, 768, 512, 384, 256, 128, 64, 32, 16, 8)
    if tm_req is not None:
        tm_cands = (max(8, _round_up(tm_req, 8)),)
    tm_cands = tuple(min(c, _round_up(M, 8)) for c in tm_cands)

    # Path 1: W1/W2 fully VMEM-resident (no streaming, no accumulator).
    if not force_streamed and tn4_req is None:
        for tm in tm_cands:
            if tm >= min(256, _round_up(M, 8)) and resident_bytes(tm) <= budget:
                return dict(streamed=False, tm=_balance_tm(tm, M), tn4=H4,
                            vmem_limit=vmem_limit)

    # Path 2: stream weights along the 4H axis with a resident accumulator.
    if tn4_req is not None:
        tn4_cands = (tn4_req,)
    else:
        tn4_cands = tuple(c for c in (2048, 1536, 1024, 768, 512, 384, 256, 128)
                          if c <= H4 and H4 % c == 0) or (H4,)
    for tm in tm_cands:
        for tn4 in tn4_cands:
            if streamed_bytes(tm, tn4) <= budget:
                return dict(streamed=True, tm=_balance_tm(tm, M), tn4=tn4,
                            vmem_limit=vmem_limit)
    # Last resort: smallest tiles.
    return dict(streamed=True, tm=tm_cands[-1], tn4=tn4_cands[-1], vmem_limit=vmem_limit)


# ----------------------------------------------------------------------------
# Kernels
# ----------------------------------------------------------------------------

def mlp_resident_kernel(x_ref, w1_ref, b1_ref, w2_ref, b2_ref, o_ref):
    # x_ref: (tm, H) in the caller's dtype; weights bf16, fully resident in VMEM.
    x = x_ref[...].astype(jnp.bfloat16)
    h1 = jnp.dot(x, w1_ref[...], preferred_element_type=jnp.float32) + b1_ref[...]
    g = _gelu_tanh(h1).astype(jnp.bfloat16)
    y = jnp.dot(g, w2_ref[...], preferred_element_type=jnp.float32) + b2_ref[...]
    # TODO(synk): training-mode dropout(output_dropout_prob) omitted — inference identity.
    o_ref[...] = y.astype(o_ref.dtype)


def mlp_streamed_kernel(x_ref, w1_ref, b1_ref, w2_ref, b2_ref, o_ref, acc_ref):
    # x_ref:  (tm, H)    (constant over j -> fetched once)
    # w1_ref: (H, tn4)   bf16 column slice of W1
    # b1_ref: (1, tn4)   f32
    # w2_ref: (tn4, H)   bf16 row slice of W2
    # b2_ref: (1, H)     f32
    # acc_ref:(tm, H)    f32 accumulator, VMEM-resident across the j axis
    j = pl.program_id(1)

    @pl.when(j == 0)
    def _():
        acc_ref[...] = jnp.zeros_like(acc_ref)

    x = x_ref[...].astype(jnp.bfloat16)
    h1 = jnp.dot(x, w1_ref[...], preferred_element_type=jnp.float32) + b1_ref[...]
    g = _gelu_tanh(h1)
    acc_ref[...] += jnp.dot(g.astype(jnp.bfloat16), w2_ref[...],
                            preferred_element_type=jnp.float32)

    @pl.when(j == pl.num_programs(1) - 1)
    def _():
        # b2 added exactly once at the final reduction step.
        # TODO(synk): training-mode dropout omitted — inference identity.
        o_ref[...] = (acc_ref[...] + b2_ref[...]).astype(o_ref.dtype)


# ----------------------------------------------------------------------------
# Wrapper
# ----------------------------------------------------------------------------

@functools.partial(jax.jit, static_argnames=("tm", "tn4", "out_dtype", "force_streamed"))
def parallel_mlp(x, w1, b1, w2, b2, *, tm=None, tn4=None, out_dtype=None,
                 force_streamed=False):
    """x: [B, S, H].  w1: [H, 4H], b1: [4H], w2: [4H, H], b2: [H].

    Returns [B, S, H] (dtype = x.dtype unless out_dtype is given).
    Matmuls run with bf16 operands and f32 accumulation.
    """
    B, S, H = x.shape
    H4 = w1.shape[1]
    M = B * S
    out_dtype = x.dtype if out_dtype is None else jnp.dtype(out_dtype)

    if tn4 is not None:
        assert H4 % tn4 == 0 and (tn4 % 128 == 0 or tn4 == H4), "bad tn4 override"

    cfg = _select_config(M, H, H4, x.dtype.itemsize, jnp.dtype(out_dtype).itemsize,
                         tm, tn4, force_streamed)
    tm_ = cfg["tm"]
    tn4_ = cfg["tn4"]
    M_pad = _round_up(M, tm_)

    x2d = x.reshape(M, H)
    if M_pad != M:
        x2d = jnp.pad(x2d, ((0, M_pad - M), (0, 0)))

    # Weights cast once (reused across every token tile); biases stay f32.
    w1b = w1.astype(jnp.bfloat16)
    w2b = w2.astype(jnp.bfloat16)
    b1_2d = b1.reshape(1, H4).astype(jnp.float32)
    b2_2d = b2.reshape(1, H).astype(jnp.float32)

    flops = 4 * M_pad * H * H4          # two GEMMs, 2 flops per MAC
    transcendentals = M_pad * H4        # tanh in gelu
    grid_m = M_pad // tm_

    if not cfg["streamed"]:
        bytes_accessed = (M_pad * H * (x.dtype.itemsize + jnp.dtype(out_dtype).itemsize)
                          + 2 * H * H4 * 2 + (H4 + H) * 4)
        out2d = pl.pallas_call(
            mlp_resident_kernel,
            out_shape=jax.ShapeDtypeStruct((M_pad, H), out_dtype),
            grid_spec=pltpu.PrefetchScalarGridSpec(
                num_scalar_prefetch=0,
                grid=(grid_m,),
                in_specs=[
                    pl.BlockSpec((tm_, H), lambda i: (i, 0)),   # x tile
                    pl.BlockSpec((H, H4), lambda i: (0, 0)),    # W1 (resident)
                    pl.BlockSpec((1, H4), lambda i: (0, 0)),    # b1
                    pl.BlockSpec((H4, H), lambda i: (0, 0)),    # W2 (resident)
                    pl.BlockSpec((1, H), lambda i: (0, 0)),     # b2
                ],
                out_specs=pl.BlockSpec((tm_, H), lambda i: (i, 0)),
            ),
            compiler_params=pltpu.CompilerParams(
                dimension_semantics=("parallel",),
                vmem_limit_bytes=cfg["vmem_limit"],
            ),
            cost_estimate=pl.CostEstimate(
                flops=flops, transcendentals=transcendentals,
                bytes_accessed=bytes_accessed),
        )(x2d, w1b, b1_2d, w2b, b2_2d)
    else:
        grid = (grid_m, H4 // tn4_)
        bytes_accessed = (M_pad * H * (x.dtype.itemsize + jnp.dtype(out_dtype).itemsize)
                          + grid_m * (2 * H * H4 * 2 + H4 * 4) + H * 4)
        out2d = pl.pallas_call(
            mlp_streamed_kernel,
            out_shape=jax.ShapeDtypeStruct((M_pad, H), out_dtype),
            grid_spec=pltpu.PrefetchScalarGridSpec(
                num_scalar_prefetch=0,
                grid=grid,
                in_specs=[
                    pl.BlockSpec((tm_, H), lambda i, j: (i, 0)),    # x tile (const over j)
                    pl.BlockSpec((H, tn4_), lambda i, j: (0, j)),   # W1 column slice
                    pl.BlockSpec((1, tn4_), lambda i, j: (0, j)),   # b1 slice
                    pl.BlockSpec((tn4_, H), lambda i, j: (j, 0)),   # W2 row slice
                    pl.BlockSpec((1, H), lambda i, j: (0, 0)),      # b2
                ],
                out_specs=pl.BlockSpec((tm_, H), lambda i, j: (i, 0)),
                scratch_shapes=[pltpu.VMEM((tm_, H), jnp.float32)],
            ),
            compiler_params=pltpu.CompilerParams(
                dimension_semantics=("parallel", "arbitrary"),
                vmem_limit_bytes=cfg["vmem_limit"],
            ),
            cost_estimate=pl.CostEstimate(
                flops=flops, transcendentals=transcendentals,
                bytes_accessed=bytes_accessed),
        )(x2d, w1b, b1_2d, w2b, b2_2d)

    if M_pad != M:
        out2d = out2d[:M]
    return out2d.reshape(B, S, H)


def init_params(key, hidden_size, init_std=0.02):
    """Synthetic init: normal(0, 0.02) weights (Megatron-style) + small random
    biases so the bias-add path is actually exercised."""
    k1, k2, k3, k4 = jax.random.split(key, 4)
    H, H4 = hidden_size, 4 * hidden_size
    w1 = (init_std * jax.random.normal(k1, (H, H4))).astype(jnp.float32)
    b1 = (0.01 * jax.random.normal(k3, (H4,))).astype(jnp.float32)
    w2 = (init_std * jax.random.normal(k2, (H4, H))).astype(jnp.float32)
    b2 = (0.01 * jax.random.normal(k4, (H,))).astype(jnp.float32)
    return w1, b1, w2, b2


if __name__ == "__main__":
    def reference(x, w1, b1, w2, b2):
        # Same bf16-operand / f32-accumulate numerics as the kernel.
        B, S, H = x.shape
        xb = x.reshape(-1, H).astype(jnp.bfloat16)
        h1 = jnp.dot(xb, w1.astype(jnp.bfloat16),
                     preferred_element_type=jnp.float32) + b1
        g = _gelu_tanh(h1)
        y = jnp.dot(g.astype(jnp.bfloat16), w2.astype(jnp.bfloat16),
                    preferred_element_type=jnp.float32) + b2
        return y.reshape(B, S, H).astype(x.dtype)

    # Test 1: primary small shape (weights-resident path).
    B, S, H = 2, 8, 32
    kx, kp = jax.random.split(jax.random.PRNGKey(0))
    x = jax.random.normal(kx, (B, S, H), dtype=jnp.float32)
    w1, b1, w2, b2 = init_params(kp, H)
    out = parallel_mlp(x, w1, b1, w2, b2)
    jax.block_until_ready(out)
    assert out.shape == (B, S, H)
    assert jnp.allclose(out, reference(x, w1, b1, w2, b2), atol=2e-3, rtol=2e-3)

    # Test 2: token count not a multiple of the tile (padding path).
    kx2 = jax.random.PRNGKey(1)
    x2 = jax.random.normal(kx2, (1, 5, H), dtype=jnp.float32)
    out2 = parallel_mlp(x2, w1, b1, w2, b2)
    jax.block_until_ready(out2)
    assert jnp.allclose(out2, reference(x2, w1, b1, w2, b2), atol=2e-3, rtol=2e-3)

    # Test 3: streamed weight / accumulator path (forced, multi-step 4H reduction).
    kx3, kp3 = jax.random.split(jax.random.PRNGKey(2))
    x3 = jax.random.normal(kx3, (2, 12, 64), dtype=jnp.float32)
    p3 = init_params(kp3, 64)
    out3 = parallel_mlp(x3, *p3, tn4=128, force_streamed=True)
    jax.block_until_ready(out3)
    assert jnp.allclose(out3, reference(x3, *p3), atol=2e-3, rtol=2e-3)

    print("KERNEL_OK")
</pallas_src>

<mosaic_0001>
module attributes {stable_mosaic.version = 11 : i64} {
  func.func @mlp_resident_kernel(%arg0: i32, %arg1: memref<16x32xf32, #tpu.memory_space<vmem>>, %arg2: memref<32x128xbf16, #tpu.memory_space<vmem>>, %arg3: memref<1x128xf32, #tpu.memory_space<vmem>>, %arg4: memref<128x32xbf16, #tpu.memory_space<vmem>>, %arg5: memref<1x32xf32, #tpu.memory_space<vmem>>, %arg6: memref<16x32xf32, #tpu.memory_space<vmem>>) attributes {dimension_semantics = [#tpu.dimension_semantics<parallel>], iteration_bounds = array<i64: 1>, scalar_prefetch = 0 : i64, scratch_operands = 0 : i64, tpu.core_type = #tpu.core_type<tc>, window_params = [{transform_indices = @transform_0, window_bounds = array<i64: 16, 32>}, {pipeline_mode = #tpu.pipeline_mode<synchronous>, transform_indices = @transform_1, window_bounds = array<i64: 32, 128>}, {pipeline_mode = #tpu.pipeline_mode<synchronous>, transform_indices = @transform_2, window_bounds = array<i64: 1, 128>}, {pipeline_mode = #tpu.pipeline_mode<synchronous>, transform_indices = @transform_3, window_bounds = array<i64: 128, 32>}, {pipeline_mode = #tpu.pipeline_mode<synchronous>, transform_indices = @transform_4, window_bounds = array<i64: 1, 32>}, {transform_indices = @transform_5, window_bounds = array<i64: 16, 32>}]} {
    %c0 = arith.constant 0 : index
    %c0_0 = arith.constant 0 : index
    %0 = vector.load %arg1[%c0, %c0_0] : memref<16x32xf32, #tpu.memory_space<vmem>>, vector<16x32xf32>
    %1 = arith.truncf %0 : vector<16x32xf32> to vector<16x32xbf16>
    %c0_1 = arith.constant 0 : index
    %c0_2 = arith.constant 0 : index
    %2 = vector.load %arg2[%c0_1, %c0_2] : memref<32x128xbf16, #tpu.memory_space<vmem>>, vector<32x128xbf16>
    %cst = arith.constant dense<0.000000e+00> : vector<16x128xf32>
    %3 = tpu.matmul %1, %2, %cst {dimension_numbers = #tpu.dot_dimension_numbers<[1], [0], [0], [1], [0, 0, 1, 1], [], []>} : vector<16x32xbf16>, vector<32x128xbf16>, vector<16x128xf32> -> vector<16x128xf32>
    %c0_3 = arith.constant 0 : index
    %c0_4 = arith.constant 0 : index
    %4 = vector.load %arg3[%c0_3, %c0_4] : memref<1x128xf32, #tpu.memory_space<vmem>>, vector<1x128xf32>
    %5 = vector.broadcast %4 : vector<1x128xf32> to vector<16x128xf32>
    %6 = arith.addf %3, %5 : vector<16x128xf32>
    %cst_5 = arith.constant 5.000000e-01 : f32
    %7 = vector.broadcast %cst_5 : f32 to vector<16x128xf32>
    %8 = arith.mulf %7, %6 : vector<16x128xf32>
    %cst_6 = arith.constant 0.797884583 : f32
    %9 = vector.broadcast %cst_6 : f32 to vector<16x128xf32>
    %10 = arith.mulf %9, %6 : vector<16x128xf32>
    %cst_7 = arith.constant 4.471500e-02 : f32
    %11 = vector.broadcast %cst_7 : f32 to vector<16x128xf32>
    %12 = arith.mulf %11, %6 : vector<16x128xf32>
    %13 = arith.mulf %12, %6 : vector<16x128xf32>
    %cst_8 = arith.constant 1.000000e+00 : f32
    %14 = vector.broadcast %cst_8 : f32 to vector<16x128xf32>
    %15 = arith.addf %14, %13 : vector<16x128xf32>
    %16 = arith.mulf %10, %15 : vector<16x128xf32>
    %17 = math.tanh %16 : vector<16x128xf32>
    %cst_9 = arith.constant 1.000000e+00 : f32
    %18 = vector.broadcast %cst_9 : f32 to vector<16x128xf32>
    %19 = arith.addf %18, %17 : vector<16x128xf32>
    %20 = arith.mulf %8, %19 : vector<16x128xf32>
    %21 = arith.truncf %20 : vector<16x128xf32> to vector<16x128xbf16>
    %c0_10 = arith.constant 0 : index
    %c0_11 = arith.constant 0 : index
    %22 = vector.load %arg4[%c0_10, %c0_11] : memref<128x32xbf16, #tpu.memory_space<vmem>>, vector<128x32xbf16>
    %cst_12 = arith.constant dense<0.000000e+00> : vector<16x32xf32>
    %23 = tpu.matmul %21, %22, %cst_12 {dimension_numbers = #tpu.dot_dimension_numbers<[1], [0], [0], [1], [0, 0, 1, 1], [], []>} : vector<16x128xbf16>, vector<128x32xbf16>, vector<16x32xf32> -> vector<16x32xf32>
    %c0_13 = arith.constant 0 : index
    %c0_14 = arith.constant 0 : index
    %24 = vector.load %arg5[%c0_13, %c0_14] : memref<1x32xf32, #tpu.memory_space<vmem>>, vector<1x32xf32>
    %25 = vector.broadcast %24 : vector<1x32xf32> to vector<16x32xf32>
    %26 = arith.addf %23, %25 : vector<16x32xf32>
    %c0_15 = arith.constant 0 : index
    %c0_16 = arith.constant 0 : index
    %27 = vector.load %arg6[%c0_15, %c0_16] : memref<16x32xf32, #tpu.memory_space<vmem>>, vector<16x32xf32>
    tpu.vector_store %arg6[%c0_15, %c0_16], %26 {strides = array<i32>} : memref<16x32xf32, #tpu.memory_space<vmem>>, vector<16x32xf32>,
    return
  }
  func.func @transform_0(%arg0: i32) -> (i32, i32) {
    %c0_i32 = arith.constant 0 : i32
    %c0_i32_0 = arith.constant 0 : i32
    return %arg0, %c0_i32 : i32, i32
  }
  func.func @transform_1(%arg0: i32) -> (i32, i32) {
    %c0_i32 = arith.constant 0 : i32
    %c0_i32_0 = arith.constant 0 : i32
    %c0_i32_1 = arith.constant 0 : i32
    return %c0_i32, %c0_i32_0 : i32, i32
  }
  func.func @transform_2(%arg0: i32) -> (i32, i32) {
    %c0_i32 = arith.constant 0 : i32
    %c0_i32_0 = arith.constant 0 : i32
    %c0_i32_1 = arith.constant 0 : i32
    return %c0_i32, %c0_i32_0 : i32, i32
  }
  func.func @transform_3(%arg0: i32) -> (i32, i32) {
    %c0_i32 = arith.constant 0 : i32
    %c0_i32_0 = arith.constant 0 : i32
    %c0_i32_1 = arith.constant 0 : i32
    return %c0_i32, %c0_i32_0 : i32, i32
  }
  func.func @transform_4(%arg0: i32) -> (i32, i32) {
    %c0_i32 = arith.constant 0 : i32
    %c0_i32_0 = arith.constant 0 : i32
    %c0_i32_1 = arith.constant 0 : i32
    return %c0_i32, %c0_i32_0 : i32, i32
  }
  func.func @transform_5(%arg0: i32) -> (i32, i32) {
    %c0_i32 = arith.constant 0 : i32
    %c0_i32_0 = arith.constant 0 : i32
    return %arg0, %c0_i32 : i32, i32
  }
}

</mosaic_0001>

<bundles_post_ra>
// kernel: parallel_mlp.1
= control target key start
LH: loop header
LB: loop body
LE: loop exit
PB: predicated region body
PF: predicated region fallthrough
CT: control target
= control target key end

     0   :  { %v338_v1 = vmov 0.0   ;;  %vm339_vm0 = vmmov 0   ;;  %vm48_vm1 = vcmask 261120   ;;  %s430_s0 = inlined_call_operand.vmem [shape: f32[16,32], index: 0, kind: input, shape index: {}]   ;;  %s431_s1 = inlined_call_operand.vmem [shape: bf16[32,128], index: 1, kind: input, shape index: {}]   ;;  %s432_s2 = inlined_call_operand.vmem [shape: f32[1,128], index: 2, kind: input, shape index: {}]   ;;  %s433_s3 = inlined_call_operand.vmem [shape: bf16[128,32], index: 3, kind: input, shape index: {}]   ;;  %s434_s4 = inlined_call_operand.vmem [shape: f32[1,32], index: 4, kind: input, shape index: {}]   ;;  %s435_s5 = inlined_call_operand.hbm [shape: f32[16,32], index: 5, kind: output, shape index: {}]  }
   0x1   :  { %v300_v0 = vld [vmem:[%s431_s1] sm:$0xff]   ;;  %267 = vmatprep.subr.bf16.mxu0 %v338_v1  ;;  %v301_v2 = vld [vmem:[%s431_s1 + $0x8] sm:$0xff]   ;;  %275 = vmatprep.subr.bf16.mxu1 %v338_v1 }
   0x2   :  { %268 = vmatpush3.bf16.msra.mxu0 %v300_v0  ;;  %271 = vmatprep.mubr.msk.bf16.mxu0 %vm339_vm0, %v338_v1  ;;  %v22_v3 = vld [vmem:[%s430_s0] sm:$0xff]  ;;  %v23_v4 = vld [vmem:[%s430_s0 + $0x8] sm:$0xff] }
   0x3   :  { %269 = vmatprep.subr.bf16.mxu0 %v338_v1  ;;  %v302_v5 = vld [vmem:[%s433_s3] sm:$0xff]   ;;  %291 = vmatprep.mubr.msk.bf16.mxu1 %vm339_vm0, %v338_v1  ;;  %v24_v6 = vpack.c.bf16 %v23_v4, %v22_v3 }
   0x4   :  { %276 = vmatpush3.bf16.msra.mxu1 %v302_v5 }
   0x5   :  { %277 = vmatprep.subr.bf16.mxu1 %v338_v1 }
   0x6   :  { %270 = vmatpush3.bf16.msra.mxu0 %v301_v2 }
   0x7   :  { %10 = vsyncpa [#allocation3], 0  ;;  %v303_v7 = vld [vmem:[%s433_s3 + $0x8] sm:$0xff]   ;;  %v304_v8 = vld [vmem:[%s433_s3 + $0x10] sm:$0xff]   ;;  %s340_s17 = smov [#allocation2]  }
   0x8   :  { %278 = vmatpush3.bf16.msra.mxu1 %v303_v7  ;;  %v305_v9 = vld [vmem:[%s433_s3 + $0x18] sm:$0xff]   ;;  %v306_v10 = vld [vmem:[%s433_s3 + $0x20] sm:$0xff]   ;;  %v307_v11 = vld [vmem:[%s433_s3 + $0x28] sm:$0xff]   ;;  %s231_s18 = sshll.u32 %s340_s17, 4  ;;  %s232_s18 = int_to_ptr.vmem [resolvable:$true] %s231_s18 }
   0x9   :  { %272 = vmatmul.mubr.msk.bf16.vlgmr.msra.gmra.mrb[0].mxu0 %vm48_vm1, %v24_v6  ;;  %279 = vmatprep.subr.bf16.mxu1 %v338_v1  ;;  %v308_v12 = vld [vmem:[%s433_s3 + $0x30] sm:$0xff]   ;;  %v309_v13 = vld [vmem:[%s433_s3 + $0x38] sm:$0xff]   ;;  %v242_v14 = vld [vmem:[%s432_s2] ss:$0 sm:$0xff]  ;;  %s314_s19 = scalar_lea.vmem %s232_s18, 256  ;;  %p319_p1 = scmp.lt.s32.totalorder %s232_s18, %s232_s18 }
   0xa   :  { %v246_v40 = vld [vmem:[%s434_s4] ss:$0 sm:$0xff]  ;;  %p315_p0 = scmp.ne.s32.totalorder %s232_s18, %s314_s19  ;;  %p320_p2 = scmp.lt.s32.totalorder %s314_s19, %s314_s19 }
   0xc   :  { %280 = vmatpush3.bf16.msra.mxu1 %v304_v8  ;;  %p321_p3 = por %p320_p2, %p319_p1 }
   0xd   :  { %281 = vmatprep.subr.bf16.mxu1 %v338_v1 }
   0xe   :  { %p322_p4 = pnand %p321_p3, %p315_p0 }
  0x10   :  { %282 = vmatpush3.bf16.msra.mxu1 %v305_v9 }
  0x11   :  { %283 = vmatprep.subr.bf16.mxu1 %v338_v1 }
  0x14   :  { %284 = vmatpush3.bf16.msra.mxu1 %v306_v10 }
  0x15   :  { %285 = vmatprep.subr.bf16.mxu1 %v338_v1 }
  0x18   :  { %286 = vmatpush3.bf16.msra.mxu1 %v307_v11 }
  0x19   :  { %287 = vmatprep.subr.bf16.mxu1 %v338_v1 }
  0x1c   :  { %288 = vmatpush3.bf16.msra.mxu1 %v308_v12 }
  0x1d   :  { %289 = vmatprep.subr.bf16.mxu1 %v338_v1 }
  0x20   :  { %290 = vmatpush3.bf16.msra.mxu1 %v309_v13 }
  0xdc   :  { %v86_v15 = vpop.f32.mrb[0].mxu0 }
  0xdd   :  { %v87_v16 = vadd.f32 %v242_v14, %v86_v15  ;;  %v273_v17 = vpop.f32.mrb[1].mxu0 }
  0xde   :  { %v89_v18 = vpop.f32.mrb[2].mxu0 }
  0xdf   :  { %v97_v19 = vmul.f32 0.044715, %v87_v16  ;;  %v90_v20 = vadd.f32 %v242_v14, %v89_v18  ;;  %v274_v21 = vpop.f32.mrb[3].mxu0  ;;  %v95_v24 = vmul.f32 0.7978846, %v87_v16  ;;  %v93_v34 = vmul.f32 0.5, %v87_v16 }
  0xe1   :  { %v99_v22 = vmul.f32 %v97_v19, %v87_v16  ;;  %v98_v23 = vmul.f32 0.044715, %v90_v20  ;;  %v96_v28 = vmul.f32 0.7978846, %v90_v20  ;;  %v94_v35 = vmul.f32 0.5, %v90_v20 }
  0xe3   :  { %v101_v25 = vadd.f32 1.0, %v99_v22  ;;  %v100_v26 = vmul.f32 %v98_v23, %v90_v20 }
  0xe5   :  { %v103_v27 = vmul.f32 %v101_v25, %v95_v24  ;;  %v102_v29 = vadd.f32 1.0, %v100_v26 }
  0xe7   :  { %v104_v30 = vmul.f32 %v102_v29, %v96_v28  ;;  %310 = vtanh.f32 %v103_v27 }
  0xe9   :  { %312 = vtanh.f32 %v104_v30 }
  0xf1   :  { %v311_v31 = vpop.eup %310 }
  0xf2   :  { %v107_v32 = vadd.f32 1.0, %v311_v31 }
  0xf3   :  { %v313_v33 = vpop.eup %312 }
  0xf4   :  { %v108_v36 = vadd.f32 1.0, %v313_v33  ;;  %v109_v37 = vmul.f32 %v107_v32, %v93_v34 }
  0xf6   :  { %v110_v38 = vmul.f32 %v108_v36, %v94_v35 }
  0xf8   :  { %v111_v39 = vpack.c.bf16 %v110_v38, %v109_v37 }
  0xfa   :  { %292 = vmatmul.mubr.bf16.vlgmr.msra.gmra.mrb[0].mxu1 %v111_v39 }
 0x1cd   :  { %v217_v41 = vpop.f32.mrb[0].mxu1 }
 0x1ce   :  { %v218_v42 = vadd.f32 %v246_v40, %v217_v41  ;;  %v293_v43 = vpop.f32.mrb[1].mxu1 }
 0x1cf   :  { %v220_v44 = vpop.f32.mrb[2].mxu1 }
 0x1d0   :  { %224 = vst.msk [vmem:[#allocation2] sm:$0xff] %vm48_vm1, %v218_v42  ;;  %v221_v45 = vadd.f32 %v246_v40, %v220_v44  ;;  %v294_v46 = vpop.f32.mrb[3].mxu1 }
 0x1d2   :  { %225 = vst.msk [vmem:[#allocation2 + $0x8] sm:$0xff] %vm48_vm1, %v221_v45 }
 0x1d3   :  { %325 = shalt.err (!%p322_p4)
}
 0x1d4   :  { %s326_s21 = scalar_lea.hbm %s435_s5, 256 }
 0x1d5   :  { %p327_p5 = scmp.ne.s32.totalorder %s435_s5, %s326_s21  ;;  %p330_p6 = scmp.lt.u32.totalorder %s326_s21, %s435_s5 }
 0x1d7   :  { %p332_p7 = pnand %p330_p6, %p327_p5 }
 0x1d9   :  { %335 = shalt.err (!%p332_p7)
}
 0x1da   :  { %s341_s26 = smov 128   ;;  %s342_s27 = smov 8  }
 0x1db   :  { %237 = dma.vmem_to_hbm [thread:$0]  %s232_s18, 256, %s435_s5, [#allocation3], %s341_s26, %s341_s26, %s342_s27  }
 0x1dc   :  { %336 = dma.done.wait [#allocation3], 256  }
 0x1dd   :  { %337 = vsyncadd [#allocation3], 4294967040 }
 0x1de   :  { %241 = vsyncpa [#allocation3], 1 }

</bundles_post_ra>
